<compile_context>
chip_gen: v7x
topology: tpu7x:2x2x1
jax: 0.10.0
libtpu: 0.0.40
codegen_flags: <defaults>
</compile_context>

<pallas_src>
import functools

import numpy as np
import jax
import jax.numpy as jnp
from jax.experimental import pallas as pl
from jax.experimental.pallas import tpu as pltpu

# --- module constants (mobilenetv2_100 -> 320 feature channels) -------------
FEAT_CH = 320          # __TIM_MODELS__['mobilenetv2_100']
OUT_CH = 512           # conv_adjust_channels output channels
BACKBONE_PATCH = 4     # downsampling factor of the synthetic backbone stand-in
POOL_OUT = 4           # AdaptiveAvgPool2d((4, 4))
POOL_CELLS = POOL_OUT * POOL_OUT
PATCH_FEATS = 4 * BACKBONE_PATCH * BACKBONE_PATCH   # 64 raw features per patch

# Explicit VMEM budget: safe on v5e/v6e (128 MiB physical) and v7x (64 MiB).
_VMEM_LIMIT_BYTES = 32 * 1024 * 1024


# ------------------------------ Pallas kernel --------------------------------
def _fused_pool_project_kernel(pool_ref, inv_ref, patch_ref, w_ref, o_ref,
                               acc_ref):
    """Streamed AdaptiveAvgPool over raw patches + folded 64->512 projection.

    Grid = (batch, hw_tiles).  Per image (batch index b):
      pool_ref  : (16, t_hw)  bf16   0/1 pooling assignment tile
      inv_ref   : (16, 1)     f32    1 / (pool cell size)
      patch_ref : (t_hw, 64)  bf16   raw patch features of image b, hw tile j
      w_ref     : (64, 512)   bf16   folded (in-conv o patchify o adjust) weight
      o_ref     : (16, 512)   f32    pooled + projected output of image b
      acc_ref   : (16, 64)    f32    VMEM scratch, pooled-sum accumulator
    """
    hw_i = pl.program_id(1)

    @pl.when(hw_i == 0)
    def _init():
        acc_ref[...] = jnp.zeros_like(acc_ref)

    # Accumulate the pooled (summed) raw patch features for this hw tile.
    acc_ref[...] += jnp.dot(pool_ref[...], patch_ref[...],
                            preferred_element_type=jnp.float32)

    @pl.when(hw_i == pl.num_programs(1) - 1)
    def _finish():
        pooled = acc_ref[...] * inv_ref[...]                     # (16, 64) f32 avg
        o_ref[...] = jnp.dot(pooled.astype(jnp.bfloat16), w_ref[...],
                             preferred_element_type=jnp.float32)  # (16, 512) f32


# ------------------------------ kernel wrapper --------------------------------
def _choose_hw_tile(hw, cap):
    """Largest hw tile <= cap that divides hw exactly and is a multiple of 128
    (lane-dense pool tile, no partial trailing block, no jnp.pad pass).
    Falls back to the full hw extent if no such divisor exists."""
    if hw <= cap:
        return hw
    t = (cap // 128) * 128
    while t >= 128:
        if hw % t == 0:
            return t
        t -= 128
    return hw   # no suitable divisor; process the image in one (large) block


def fused_pool_project(patches, pool_mask, inv_cnt, w_fold, *, hw_tile_cap=8192):
    """patches (N, HW, 64) bf16 -> pooled+projected (N, 16, 512) f32."""
    n, hw, k = patches.shape
    po, hw2 = pool_mask.shape
    assert hw == hw2 and po == POOL_CELLS and k == PATCH_FEATS
    kk, cout = w_fold.shape
    assert kk == k

    t_hw = _choose_hw_tile(hw, hw_tile_cap)
    grid = (n, hw // t_hw)

    return pl.pallas_call(
        _fused_pool_project_kernel,
        out_shape=jax.ShapeDtypeStruct((n, po, cout), jnp.float32),
        grid=grid,
        in_specs=[
            pl.BlockSpec((po, t_hw), lambda b, j: (0, j)),          # pool tile
            pl.BlockSpec((po, 1), lambda b, j: (0, 0)),             # 1/cell-size
            pl.BlockSpec((None, t_hw, k), lambda b, j: (b, j, 0)),  # patches
            pl.BlockSpec((k, cout), lambda b, j: (0, 0)),           # folded weight
        ],
        out_specs=pl.BlockSpec((None, po, cout), lambda b, j: (b, 0, 0)),
        scratch_shapes=[pltpu.VMEM((po, k), jnp.float32)],
        compiler_params=pltpu.CompilerParams(
            dimension_semantics=("parallel", "arbitrary"),
            vmem_limit_bytes=_VMEM_LIMIT_BYTES,
        ),
    )(pool_mask, inv_cnt, patches, w_fold)


# ------------------------------- parameters ----------------------------------
def init_params(key):
    k1, k2, k3 = jax.random.split(key, 3)
    # conv_input_channels: Conv2d(4, 3, 1x1, bias=False) stored as (Cin=4, Cout=3)
    w_in = jax.random.uniform(k1, (4, 3), jnp.float32, -0.5, 0.5)
    # TODO(synk): the pretrained timm mobilenetv2_100 feature backbone cannot be
    # reproduced without its checkpoint; replaced by a deterministic linear
    # 4x4/stride-4 patchify projection to 320 channels (same output channel
    # count and downsampling role). Rows ordered (c3, ph, pw).
    p = BACKBONE_PATCH
    w_bb = jax.random.normal(k2, (3 * p * p, FEAT_CH), jnp.float32) * 0.05
    # conv_adjust_channels: Conv2d(320, 512, 1x1, bias=False) as (Cin, Cout)
    w_adj = jax.random.normal(k3, (FEAT_CH, OUT_CH), jnp.float32) * (FEAT_CH ** -0.5)
    return {"w_in": w_in, "w_bb": w_bb, "w_adj": w_adj}


def prepare_params(params):
    """Host-side full weight fold + bf16 cast.

    Folds (input 1x1 conv 4->3) o (patchify 3->320) o (adjust 320->512) into a
    single (64, 512) weight.  Exact only because the backbone stand-in is
    linear; NOT valid once a real nonlinear backbone replaces it."""
    p = BACKBONE_PATCH
    hi = jax.lax.Precision.HIGHEST
    w_bb = params["w_bb"].reshape(3, p * p, FEAT_CH)             # (c3, s, o)
    # Fold the 4->3 input 1x1 conv into the patchify weight: rows (c4, ph, pw).
    w1 = jnp.einsum("ic,cso->iso", params["w_in"], w_bb, precision=hi)
    w1 = w1.reshape(PATCH_FEATS, FEAT_CH)                        # (64, 320)
    # Fold the 320->512 channel adjust as well (linear stand-in only).
    w_fold = jnp.dot(w1, params["w_adj"], precision=hi)          # (64, 512)
    return {"w_fold": w_fold.astype(jnp.bfloat16)}


def adaptive_pool_assignment(h_in, w_in, h_out, w_out):
    """AdaptiveAvgPool2d((h_out, w_out)) as a 0/1 assignment matrix (exact in
    bf16) plus per-output-cell counts."""
    mask = np.zeros((h_out * w_out, h_in * w_in), dtype=np.float32)
    counts = np.zeros((h_out * w_out,), dtype=np.float32)
    for oh in range(h_out):
        hs = (oh * h_in) // h_out
        he = -(-((oh + 1) * h_in) // h_out)
        for ow in range(w_out):
            ws = (ow * w_in) // w_out
            we = -(-((ow + 1) * w_in) // w_out)
            o = oh * w_out + ow
            counts[o] = (he - hs) * (we - ws)
            for ih in range(hs, he):
                for iw in range(ws, we):
                    mask[o, ih * w_in + iw] = 1.0
    return mask, counts


# --------------------------------- forward ------------------------------------
def timm_backbone_forward(prepared, x_nchw, *, hw_tile_cap=8192):
    n, c, h, w = x_nchw.shape
    assert c == 4
    p = BACKBONE_PATCH
    assert h % p == 0 and w % p == 0
    ho, wo = h // p, w // p
    hw = ho * wo

    # Raw 4x4 patch extraction straight from NCHW in one XLA pass: (N, HW, 64)
    # bf16, per-patch feature order (c, ph, pw) matching w_fold's row order.
    # TODO(synk): if profiling shows this x->patches materialization dominates
    # (it is the only remaining multi-pass HBM term), move the regroup into the
    # kernel by blocking x over rows of patches.
    patches = (
        x_nchw.reshape(n, c, ho, p, wo, p)
        .transpose(0, 2, 4, 1, 3, 5)
        .reshape(n, hw, c * p * p)
        .astype(jnp.bfloat16)
    )

    mask, counts = adaptive_pool_assignment(ho, wo, POOL_OUT, POOL_OUT)
    pool_mask = jnp.asarray(mask, jnp.bfloat16)                    # exact 0/1
    inv_cnt = jnp.asarray(1.0 / counts, jnp.float32)[:, None]      # (16, 1) f32

    # One fused Pallas call: streamed pooling + folded 64->512 projection.
    out = fused_pool_project(patches, pool_mask, inv_cnt, prepared["w_fold"],
                             hw_tile_cap=hw_tile_cap)              # (N, 16, 512)
    out = out.reshape(n, POOL_OUT, POOL_OUT, OUT_CH)
    return jnp.transpose(out, (0, 3, 1, 2))                        # (N, 512, 4, 4)


# ------------------------- f32 reference (original op order) ------------------
def reference_forward(params, x_nchw):
    n, c, h, w = x_nchw.shape
    p = BACKBONE_PATCH
    ho, wo = h // p, w // p
    hi = jax.lax.Precision.HIGHEST
    x3 = jnp.einsum("nchw,cd->ndhw", x_nchw, params["w_in"], precision=hi)
    patches = (
        x3.reshape(n, 3, ho, p, wo, p)
        .transpose(0, 2, 4, 1, 3, 5)
        .reshape(n * ho * wo, 3 * p * p)
    )
    feat = jnp.dot(patches, params["w_bb"], precision=hi)        # backbone stand-in
    feat = jnp.dot(feat, params["w_adj"], precision=hi)          # adjust (before pool)
    feat = feat.reshape(n, ho * wo, OUT_CH)
    mask, counts = adaptive_pool_assignment(ho, wo, POOL_OUT, POOL_OUT)
    pool = jnp.asarray(mask / counts[:, None])
    pooled = jnp.einsum("ps,nsc->npc", pool, feat, precision=hi)
    return pooled.reshape(n, POOL_OUT, POOL_OUT, OUT_CH).transpose(0, 3, 1, 2)


# ----------------------------------- main --------------------------------------
if __name__ == "__main__":
    key = jax.random.PRNGKey(0)
    pkey, xkey1, xkey2 = jax.random.split(key, 3)
    params = init_params(pkey)
    prepared = prepare_params(params)

    # Test 1: small NCHW input (single hw tile per image).
    x1 = jax.random.normal(xkey1, (2, 4, 32, 32), jnp.float32)
    fwd1 = jax.jit(functools.partial(timm_backbone_forward, prepared))
    out1 = jax.block_until_ready(fwd1(x1))
    assert out1.shape == (2, OUT_CH, POOL_OUT, POOL_OUT), out1.shape
    assert out1.dtype == jnp.float32
    ref1 = reference_forward(params, x1)
    rel1 = float(jnp.linalg.norm(out1 - ref1) / jnp.linalg.norm(ref1))
    assert rel1 < 5e-2, rel1

    # Test 2: exercises the streamed hw-tile accumulation path (4 hw tiles).
    x2 = jax.random.normal(xkey2, (2, 4, 64, 128), jnp.float32)
    fwd2 = jax.jit(functools.partial(timm_backbone_forward, prepared,
                                     hw_tile_cap=128))
    out2 = jax.block_until_ready(fwd2(x2))
    assert out2.shape == (2, OUT_CH, POOL_OUT, POOL_OUT), out2.shape
    ref2 = reference_forward(params, x2)
    rel2 = float(jnp.linalg.norm(out2 - ref2) / jnp.linalg.norm(ref2))
    assert rel2 < 5e-2, rel2

    print("KERNEL_OK")
</pallas_src>

<mosaic_0001>
module attributes {stable_mosaic.version = 11 : i64} {
  func.func @_fused_pool_project_kernel(%arg0: i32, %arg1: i32, %arg2: memref<16x64xbf16, #tpu.memory_space<vmem>>, %arg3: memref<16x1xf32, #tpu.memory_space<vmem>>, %arg4: memref<1x64x64xbf16, #tpu.memory_space<vmem>>, %arg5: memref<64x512xbf16, #tpu.memory_space<vmem>>, %arg6: memref<1x16x512xf32, #tpu.memory_space<vmem>>, %arg7: memref<16x64xf32, #tpu.memory_space<vmem>>) attributes {dimension_semantics = [#tpu.dimension_semantics<parallel>, #tpu.dimension_semantics<arbitrary>], iteration_bounds = array<i64: 2, 1>, scalar_prefetch = 0 : i64, scratch_operands = 1 : i64, tpu.core_type = #tpu.core_type<tc>, window_params = [{transform_indices = @transform_0, window_bounds = array<i64: 16, 64>}, {pipeline_mode = #tpu.pipeline_mode<synchronous>, transform_indices = @transform_1, window_bounds = array<i64: 16, 1>}, {transform_indices = @transform_2, window_bounds = array<i64: 1, 64, 64>}, {pipeline_mode = #tpu.pipeline_mode<synchronous>, transform_indices = @transform_3, window_bounds = array<i64: 64, 512>}, {transform_indices = @transform_4, window_bounds = array<i64: 1, 16, 512>}]} {
    %c0_i32 = arith.constant 0 : i32
    %0 = arith.cmpi eq, %arg1, %c0_i32 : i32
    %1 = arith.extui %0 : i1 to i32
    %c0_i32_0 = arith.constant 0 : i32
    %2 = arith.cmpi ne, %1, %c0_i32_0 : i32
    scf.if %2 {
      %cst_11 = arith.constant 0.000000e+00 : f32
      %13 = vector.broadcast %cst_11 : f32 to vector<16x64xf32>
      %c0_12 = arith.constant 0 : index
      %c0_13 = arith.constant 0 : index
      %14 = vector.load %arg7[%c0_12, %c0_13] : memref<16x64xf32, #tpu.memory_space<vmem>>, vector<16x64xf32>
      tpu.vector_store %arg7[%c0_12, %c0_13], %13 {strides = array<i32>} : memref<16x64xf32, #tpu.memory_space<vmem>>, vector<16x64xf32>,
    } else {
    }
    %c0 = arith.constant 0 : index
    %c0_1 = arith.constant 0 : index
    %3 = vector.load %arg7[%c0, %c0_1] : memref<16x64xf32, #tpu.memory_space<vmem>>, vector<16x64xf32>
    %c0_2 = arith.constant 0 : index
    %c0_3 = arith.constant 0 : index
    %4 = vector.load %arg2[%c0_2, %c0_3] : memref<16x64xbf16, #tpu.memory_space<vmem>>, vector<16x64xbf16>
    %c0_4 = arith.constant 0 : index
    %c0_5 = arith.constant 0 : index
    %c0_6 = arith.constant 0 : index
    %5 = vector.load %arg4[%c0_4, %c0_5, %c0_6] : memref<1x64x64xbf16, #tpu.memory_space<vmem>>, vector<1x64x64xbf16>
    %6 = vector.shape_cast %5 : vector<1x64x64xbf16> to vector<64x64xbf16>
    %cst = arith.constant dense<0.000000e+00> : vector<16x64xf32>
    %7 = tpu.matmul %4, %6, %cst {dimension_numbers = #tpu.dot_dimension_numbers<[1], [0], [0], [1], [0, 0, 1, 1], [], []>} : vector<16x64xbf16>, vector<64x64xbf16>, vector<16x64xf32> -> vector<16x64xf32>
    %8 = arith.addf %3, %7 : vector<16x64xf32>
    %c0_7 = arith.constant 0 : index
    %c0_8 = arith.constant 0 : index
    %9 = vector.load %arg7[%c0_7, %c0_8] : memref<16x64xf32, #tpu.memory_space<vmem>>, vector<16x64xf32>
    tpu.vector_store %arg7[%c0_7, %c0_8], %8 {strides = array<i32>} : memref<16x64xf32, #tpu.memory_space<vmem>>, vector<16x64xf32>,
    %c0_i32_9 = arith.constant 0 : i32
    %10 = arith.cmpi eq, %arg1, %c0_i32_9 : i32
    %11 = arith.extui %10 : i1 to i32
    %c0_i32_10 = arith.constant 0 : i32
    %12 = arith.cmpi ne, %11, %c0_i32_10 : i32
    scf.if %12 {
      %c0_11 = arith.constant 0 : index
      %c0_12 = arith.constant 0 : index
      %13 = vector.load %arg7[%c0_11, %c0_12] : memref<16x64xf32, #tpu.memory_space<vmem>>, vector<16x64xf32>
      %c0_13 = arith.constant 0 : index
      %c0_14 = arith.constant 0 : index
      %14 = vector.load %arg3[%c0_13, %c0_14] : memref<16x1xf32, #tpu.memory_space<vmem>>, vector<16x1xf32>
      %15 = vector.broadcast %14 : vector<16x1xf32> to vector<16x64xf32>
      %16 = arith.mulf %13, %15 : vector<16x64xf32>
      %17 = arith.truncf %16 : vector<16x64xf32> to vector<16x64xbf16>
      %c0_15 = arith.constant 0 : index
      %c0_16 = arith.constant 0 : index
      %18 = vector.load %arg5[%c0_15, %c0_16] : memref<64x512xbf16, #tpu.memory_space<vmem>>, vector<64x512xbf16>
      %cst_17 = arith.constant dense<0.000000e+00> : vector<16x512xf32>
      %19 = tpu.matmul %17, %18, %cst_17 {dimension_numbers = #tpu.dot_dimension_numbers<[1], [0], [0], [1], [0, 0, 1, 1], [], []>} : vector<16x64xbf16>, vector<64x512xbf16>, vector<16x512xf32> -> vector<16x512xf32>
      %c0_18 = arith.constant 0 : index
      %c0_19 = arith.constant 0 : index
      %c0_20 = arith.constant 0 : index
      %20 = vector.load %arg6[%c0_18, %c0_19, %c0_20] : memref<1x16x512xf32, #tpu.memory_space<vmem>>, vector<1x16x512xf32>
      %21 = vector.shape_cast %20 : vector<1x16x512xf32> to vector<16x512xf32>
      %22 = vector.shape_cast %19 : vector<16x512xf32> to vector<1x16x512xf32>
      tpu.vector_store %arg6[%c0_18, %c0_19, %c0_20], %22 {strides = array<i32>} : memref<1x16x512xf32, #tpu.memory_space<vmem>>, vector<1x16x512xf32>,
    } else {
    }
    return
  }
  func.func @transform_0(%arg0: i32, %arg1: i32) -> (i32, i32) {
    %c0_i32 = arith.constant 0 : i32
    %c0_i32_0 = arith.constant 0 : i32
    return %c0_i32, %arg1 : i32, i32
  }
  func.func @transform_1(%arg0: i32, %arg1: i32) -> (i32, i32) {
    %c0_i32 = arith.constant 0 : i32
    %c0_i32_0 = arith.constant 0 : i32
    %c0_i32_1 = arith.constant 0 : i32
    return %c0_i32, %c0_i32_0 : i32, i32
  }
  func.func @transform_2(%arg0: i32, %arg1: i32) -> (i32, i32, i32) {
    %c0_i32 = arith.constant 0 : i32
    %c0_i32_0 = arith.constant 0 : i32
    return %arg0, %arg1, %c0_i32 : i32, i32, i32
  }
  func.func @transform_3(%arg0: i32, %arg1: i32) -> (i32, i32) {
    %c0_i32 = arith.constant 0 : i32
    %c0_i32_0 = arith.constant 0 : i32
    %c0_i32_1 = arith.constant 0 : i32
    return %c0_i32, %c0_i32_0 : i32, i32
  }
  func.func @transform_4(%arg0: i32, %arg1: i32) -> (i32, i32, i32) {
    %c0_i32 = arith.constant 0 : i32
    %c0_i32_0 = arith.constant 0 : i32
    %c0_i32_1 = arith.constant 0 : i32
    return %arg0, %c0_i32, %c0_i32_0 : i32, i32, i32
  }
}

</mosaic_0001>

<bundles_post_ra>
// kernel: timm_backbone_forward.1
= control target key start
LH: loop header
LB: loop body
LE: loop exit
PB: predicated region body
PF: predicated region fallthrough
CT: control target
= control target key end

     0   :  { %s802_s15 = smov 0   ;;  %s804_s16 = smov 0   ;;  %s906_s0 = inlined_call_operand.vmem [shape: bf16[16,64], index: 0, kind: input, shape index: {}]   ;;  %s907_s1 = inlined_call_operand.vmem [shape: f32[16,1], index: 1, kind: input, shape index: {}]   ;;  %s908_s2 = inlined_call_operand.vmem [shape: bf16[2,64,64], index: 2, kind: input, shape index: {}]   ;;  %s909_s3 = inlined_call_operand.vmem [shape: bf16[64,512], index: 3, kind: input, shape index: {}]   ;;  %s910_s4 = inlined_call_operand.vmem [shape: f32[2,16,512], index: 4, kind: output, shape index: {}]  }
   0x1   :  { %s806_s17 = smov 0  }
   0x2 LB: > { %s26_s18 = sadd.s32 1, %s768_s16  ;;  %p644_p0 = scmp.ge.s32.totalorder %s772_s17, 1  ;;  %s772_s17 = sphi %s806_s17, %s14_s17   ;;  %s768_s16 = sphi %s804_s16, %s912_s16   ;;  %s764_s15 = sphi %s802_s15, %s911_s15  }
   0x3   : > { %p28_p1 = scmp.ge.s32.totalorder %s26_s18, 2  ;;  %p190_p2 = scmp.lt.s32.totalorder %s772_s17, 3 }
   0x5   : > { %s914_s18 = smov (%p28_p1, %s26_s18), 0  ;;  %p191_p3 = pnand %p644_p0, %p190_p2 }
   0x6   : > { %p229_p4 = scmp.lt.s32.totalorder (!%p191_p3), %s764_s15, 1  ;;  %vm248_vm0 = vcmask (!%p191_p3), 523264   ;;  %v774_v0 = vmov (!%p191_p3), 0.0   ;;  %vm775_vm1 = vmmov (!%p191_p3), 0   ;;  %v346_v1 = vld [vmem:[%s907_s1] sm:$0xff] (!%p191_p3)  ;;  %v776_v2 = vmov (!%p191_p3), 0  }
   0x7   : > { %194 = sbr.rel (%p191_p3) target bundleno = 477 (0x1dd), region = 36  ;;  %682 = vmatprep.subr.bf16.mxu0 (!%p191_p3), %v774_v0  ;;  %690 = vmatprep.mubr.msk.bf16.mxu0 (!%p191_p3), %vm775_vm1, %v774_v0  ;;  %249 = vst.msk [vmem:[#allocation2] sm:$0xff] (!%p191_p3), %vm248_vm0, %v774_v0  ;;  %250 = vst.msk [vmem:[#allocation2 + $0x8] sm:$0xff] (!%p191_p3), %vm248_vm0, %v774_v0  ;;  %v347_v3 = vld [vmem:[%s907_s1 + $0x8] sm:$0xff] (!%p191_p3)  ;;  %v726_v8 = vld [vmem:[%s906_s0] sm:$0xff] (!%p191_p3)  }
   0x8   : > { %721 = vset.pattern.permute.xlu0 (!%p191_p3), %v776_v2  ;;  %492 = vmatprep.mubr.bf16.mxu1 (!%p191_p3), %v776_v2  ;;  %v361_v9 = vld [vmem:[%s909_s3] sm:$0xff] (!%p191_p3)  ;;  %v363_v10 = vld [vmem:[%s909_s3 + $0x10] sm:$0xff] (!%p191_p3)  ;;  %v729_v12 = vld [vmem:[%s909_s3 + $0x8] ss:$16 sps:$4 sm:$0xff] (!%p191_p3)  }
   0x9   : > { %350 = vperm.xlu0 (!%p191_p3), %721, %v346_v1   ;;  %v727_v11 = vld [vmem:[%s909_s3 + $0x4] ss:$16 sps:$4 sm:$0xff] (!%p191_p3)   ;;  %v731_v13 = vld [vmem:[%s909_s3 + $0xc] ss:$16 sps:$4 sm:$0xff] (!%p191_p3)   ;;  %v655_v14 = vcombine.low (!%p191_p3), %v361_v9, %v363_v10  ;;  %v734_v17 = vld [vmem:[%s909_s3 + $0x28] ss:$16 sps:$4 sm:$0xff] (!%p191_p3)  }
   0xa   : > { %460 = vmatprep.subr.bf16.mxu1 (!%p191_p3), %v727_v11  ;;  %v732_v15 = vld [vmem:[%s909_s3 + $0x24] ss:$16 sps:$4 sm:$0xff] (!%p191_p3)   ;;  %v736_v16 = vld [vmem:[%s909_s3 + $0x2c] ss:$16 sps:$4 sm:$0xff] (!%p191_p3)   ;;  %v737_v18 = vld [vmem:[%s909_s3 + $0x20] ss:$16 sps:$4 sm:$0xff] (!%p191_p3)  }
   0xb   : > { %461 = vmatpush1.bf16.msra.mxu1 (!%p191_p3), %v655_v14  ;;  %v738_v19 = vld [vmem:[%s909_s3 + $0x44] ss:$16 sps:$4 sm:$0xff] (!%p191_p3)   ;;  %v742_v20 = vld [vmem:[%s909_s3 + $0x4c] ss:$16 sps:$4 sm:$0xff] (!%p191_p3)   ;;  %v740_v21 = vld [vmem:[%s909_s3 + $0x48] ss:$16 sps:$4 sm:$0xff] (!%p191_p3)  }
   0xc   : > { %462 = vmatprep.subr.bf16.mxu1 (!%p191_p3), %v732_v15  ;;  %v743_v22 = vld [vmem:[%s909_s3 + $0x40] ss:$16 sps:$4 sm:$0xff] (!%p191_p3)   ;;  %v744_v23 = vld [vmem:[%s909_s3 + $0x64] ss:$16 sps:$4 sm:$0xff] (!%p191_p3)   ;;  %v748_v24 = vld [vmem:[%s909_s3 + $0x6c] ss:$16 sps:$4 sm:$0xff] (!%p191_p3)  }
   0xd   : > { %355 = vperm.xlu0 (!%p191_p3), %721, %v347_v3   ;;  %v746_v25 = vld [vmem:[%s909_s3 + $0x68] ss:$16 sps:$4 sm:$0xff] (!%p191_p3)   ;;  %v749_v26 = vld [vmem:[%s909_s3 + $0x60] ss:$16 sps:$4 sm:$0xff] (!%p191_p3)  }
   0xe   : > { %s916_s15 = smov (!%p229_p4, %s764_s15), 1  ;;  %v251_v27 = vld [vmem:[#allocation2] sm:$0xff]  ;;  %v252_v29 = vld [vmem:[#allocation2 + $0x8] sm:$0xff] }
   0xf   : > { %s675_s23 = sshll.u32 %s916_s15, 5  ;;  %463 = vmatpush1.bf16.msra.mxu1 %v737_v18  ;;  %s676_s19 = sshll.u32 %s916_s15, 6 }
  0x10   : > { %s236_s26 = scalar_lea.vmem %s908_s2, %s675_s23  ;;  %464 = vmatprep.subr.bf16.mxu1 %v738_v19  ;;  %s242_s22 = scalar_lea.vmem %s910_s4, %s676_s19 }
  0x11   : > { %v722_v4 = vld [vmem:[%s236_s26] sm:$0xff]   ;;  %v723_v5 = vld [vmem:[%s236_s26 + $0x8] sm:$0xff]   ;;  %v724_v6 = vld [vmem:[%s236_s26 + $0x10] sm:$0xff]  }
  0x12   : > { %683 = vmatpush3.bf16.msra.mxu0 %v722_v4  ;;  %v725_v7 = vld [vmem:[%s236_s26 + $0x18] sm:$0xff]  }
  0x13   : > { %684 = vmatprep.subr.bf16.mxu0 %v774_v0  ;;  %465 = vmatpush1.bf16.msra.mxu1 %v743_v22 }
  0x14   : > { %466 = vmatprep.subr.bf16.mxu1 %v744_v23 }
  0x16   : > { %685 = vmatpush3.bf16.msra.mxu0 %v723_v5 }
  0x17   : > { %686 = vmatprep.subr.bf16.mxu0 %v774_v0  ;;  %467 = vmatpush1.bf16.msra.mxu1 %v749_v26 }
  0x1a   : > { %687 = vmatpush3.bf16.msra.mxu0 %v724_v6 }
  0x1b   : > { %688 = vmatprep.subr.bf16.mxu0 %v774_v0 }
  0x1e   : > { %689 = vmatpush3.bf16.msra.mxu0 %v725_v7 }
  0x1f   : > { %503 = vmatprep.subr.bf16.mxu0 %v731_v13 }
  0x21   : > { %691 = vmatmul.mubr.msk.bf16.vlgmr.msra.gmra.mrb[0].mxu0 %vm248_vm0, %v726_v8 }
  0x22   : > { %535 = vmatprep.mubr.bf16.mxu0 %v776_v2  ;;  %504 = vmatpush1.bf16.msra.mxu0 %v729_v12 }
  0x23   : > { %505 = vmatprep.subr.bf16.mxu0 %v736_v16 }
  0x26   : > { %506 = vmatpush1.bf16.msra.mxu0 %v734_v17 }
  0x27   : > { %507 = vmatprep.subr.bf16.mxu0 %v742_v20 }
  0x2a   : > { %508 = vmatpush1.bf16.msra.mxu0 %v740_v21 }
  0x2b   : > { %509 = vmatprep.subr.bf16.mxu0 %v748_v24 }
  0x2e   : > { %510 = vmatpush1.bf16.msra.mxu0 %v746_v25 }
  0x88   : > { %v351_v35 = vpop.permute.xlu0 %350 }
  0x8c   : > { %v356_v37 = vpop.permute.xlu0 %355 }
  0xf4   : > { %v330_v28 = vpop.f32.mrb[0].mxu0 }
  0xf5   : > { %v337_v30 = vadd.f32 %v330_v28, %v251_v27  ;;  %v692_v31 = vpop.f32.mrb[1].mxu0 }
  0xf6   : > { %v333_v32 = vpop.f32.mrb[2].mxu0 }
  0xf7   : > { %339 = vst.msk [vmem:[#allocation2] sm:$0xff] %vm248_vm0, %v337_v30  ;;  %v338_v33 = vadd.f32 %v333_v32, %v252_v29  ;;  %v693_v34 = vpop.f32.mrb[3].mxu0 }
  0xf9   : > { %340 = vst.msk [vmem:[#allocation2 + $0x8] sm:$0xff] %vm248_vm0, %v338_v33 }
  0xfe   : > { %v344_v36 = vld [vmem:[#allocation2] sm:$0xff] }
  0xff   : > { %v358_v39 = vmul.f32 %v351_v35, %v344_v36 }
 0x100   : > { %v345_v38 = vld [vmem:[#allocation2 + $0x8] sm:$0xff] }
 0x101   : > { %v359_v40 = vmul.f32 %v356_v37, %v345_v38 }
 0x103   : > { %v360_v41 = vpack.c.bf16 %v359_v40, %v358_v39 }
 0x105   : > { %671 = vmatmul.mubr.msk.bf16.vlgmr.msra.gmra.mrb[0].mxu1 %vm248_vm0, %v360_v41  ;;  %672 = vmatmul.mubr.msk.bf16.vlgmr.msra.gmra.mrb[4].mxu0 %vm248_vm0, %v360_v41 }
 0x1d8   : > { %v494_v42 = vpop.f32.mrb[0].mxu1  ;;  %v537_v43 = vpop.f32.mrb[4].mxu0 }
 0x1d9   : > { %546 = vst [vmem:[%s242_s22] sm:$0xff] %v494_v42  ;;  %548 = vst [vmem:[%s242_s22 + $0x10] sm:$0xff] %v537_v43  ;;  %v496_v44 = vpop.f32.mrb[1].mxu1  ;;  %v539_v45 = vpop.f32.mrb[5].mxu0 }
 0x1da   : > { %547 = vst [vmem:[%s242_s22 + $0x8] sm:$0xff] %v496_v44  ;;  %549 = vst [vmem:[%s242_s22 + $0x18] sm:$0xff] %v539_v45  ;;  %v498_v46 = vpop.f32.mrb[2].mxu1  ;;  %v541_v47 = vpop.f32.mrb[6].mxu0 }
 0x1db   : > { %550 = vst [vmem:[%s242_s22 + $0x20] sm:$0xff] %v498_v46  ;;  %552 = vst [vmem:[%s242_s22 + $0x30] sm:$0xff] %v541_v47  ;;  %v500_v48 = vpop.f32.mrb[3].mxu1  ;;  %v543_v49 = vpop.f32.mrb[7].mxu0 }
 0x1dc   : > { %551 = vst [vmem:[%s242_s22 + $0x28] sm:$0xff] %v500_v48  ;;  %553 = vst [vmem:[%s242_s22 + $0x38] sm:$0xff] %v543_v49 }
 0x1dd PF: > { %s14_s17 = sadd.s32 1, %s772_s17   ;;  %s911_s15 = smov %s768_s16 }
 0x1de   : > { %p11_p5 = scmp.ge.s32.totalorder %s14_s17, 4   ;;  %s912_s16 = smov %s914_s18 }
 0x1e0   :  { %13 = sbr.rel (!%p11_p5) target bundleno = 2 (0x2), region = 77 }

</bundles_post_ra>
